<compile_context>
chip_gen: v7x
topology: tpu7x:2x2x1
jax: 0.10.0
libtpu: 0.0.40
codegen_flags: <defaults>
</compile_context>

<pallas_src>
import math

import jax
import jax.numpy as jnp
from jax.experimental import pallas as pl
from jax.experimental.pallas import tpu as pltpu


def attn_kernel(enc_ref, hid_ref, wh_ref, ws_ref, bs_ref, v_ref, out_ref):
    # enc_ref: [tT, B, H]  tile of encoder outputs (native [src_len, B, H] order)
    # hid_ref: [B, H]      last decoder hidden state (tgt_len == 1)
    # wh_ref : [H, H]      hidden_h.weight^T  (pre-transposed once; x @ W)
    # ws_ref : [H, H]      hidden_s.weight^T
    # bs_ref : [1, H]      hidden_s.bias
    # v_ref  : [1, H]      v.weight
    # out_ref: [tT, B]     softmax-over-batch attention energies
    tT, B, H = enc_ref.shape

    # One 2-D MXU matmul over the whole tile instead of B batched matmuls.
    enc2d = enc_ref[...].reshape(tT * B, H)
    dec = jnp.dot(enc2d, wh_ref[...], preferred_element_type=jnp.float32)   # [tT*B, H]

    # hidden_s(last_hidden): identical for every t, compute once per batch row.
    s = (jnp.dot(hid_ref[...], ws_ref[...], preferred_element_type=jnp.float32)
         + bs_ref[...].astype(jnp.float32))                                  # [B, H]

    energy = jnp.tanh(dec.reshape(tT, B, H) + s[None, :, :])                 # [tT, B, H] f32

    # v(energy): one scalar per (t, b).
    e = jnp.sum(energy * v_ref[...].astype(jnp.float32)[None, :, :], axis=-1)  # [tT, B]

    # Legacy F.softmax (implicit dim=0 on [B,1,T]) == softmax over the batch
    # dim, which is the LAST axis in this [tT, B] layout (per-t independent).
    m = jnp.max(e, axis=-1, keepdims=True)
    p = jnp.exp(e - m)
    inv = pl.reciprocal(jnp.sum(p, axis=-1, keepdims=True), approx=True)
    out_ref[...] = p * inv


def prepare_attn_params(params):
    """One-time layout prep (call OUTSIDE the decode loop): transpose Linear
    weights so the kernel does plain `x @ W` with no per-step HBM transpose."""
    H = params['w_h'].shape[0]
    return {
        'wh_t': jnp.asarray(params['w_h']).T,      # [in, out]
        'ws_t': jnp.asarray(params['w_s']).T,
        'b_s':  jnp.asarray(params['b_s']).reshape(1, H),
        'v':    jnp.asarray(params['v']).reshape(1, H),
    }


def attn_forward(last_hidden, encoder_outputs, kparams, *, t_tile=128):
    """last_hidden: [1, B, H], encoder_outputs: [T, B, H] (native PyTorch order).
    kparams: output of prepare_attn_params.
    Returns [B, 1, 1, T] -- same as Attn.forward(...) with encoder_mask=None."""
    # TODO(synk): encoder_mask masked_fill path and coverage=True branch are not
    # implemented (module is used with coverage=False, mask=None).
    T, B, H = encoder_outputs.shape

    # Tile the src_len axis; B and H stay whole inside each block.
    if T >= t_tile:
        tT = t_tile
    else:
        tT = max(8, ((T + 7) // 8) * 8)          # single sublane-aligned tile
    T_pad = pl.cdiv(T, tT) * tT
    enc = encoder_outputs
    if T_pad != T:
        enc = jnp.pad(enc, ((0, T_pad - T), (0, 0), (0, 0)))
    hid = last_hidden[0]                         # [B, H]

    out = pl.pallas_call(
        attn_kernel,
        out_shape=jax.ShapeDtypeStruct((T_pad, B), jnp.float32),
        grid_spec=pltpu.PrefetchScalarGridSpec(
            num_scalar_prefetch=0,
            grid=(T_pad // tT,),
            in_specs=[
                pl.BlockSpec((tT, B, H), lambda i: (i, 0, 0)),   # encoder tile
                pl.BlockSpec((B, H), lambda i: (0, 0)),          # hidden (resident)
                pl.BlockSpec((H, H), lambda i: (0, 0)),          # Wh^T
                pl.BlockSpec((H, H), lambda i: (0, 0)),          # Ws^T
                pl.BlockSpec((1, H), lambda i: (0, 0)),          # b_s
                pl.BlockSpec((1, H), lambda i: (0, 0)),          # v
            ],
            out_specs=pl.BlockSpec((tT, B), lambda i: (i, 0)),
        ),
        compiler_params=pltpu.CompilerParams(
            dimension_semantics=("parallel",)),   # shards T tiles across v7x TCs
    )(enc, hid, kparams['wh_t'], kparams['ws_t'], kparams['b_s'], kparams['v'])

    # score() is [B, 1, T]; forward() softmaxes (done in-kernel over B) and
    # unsqueeze(1) -> [B, 1, 1, T]. The [T,B] -> [B,T] transpose here is tiny
    # (no H dimension), unlike the removed [T,B,H] transpose.
    return out[:T].T.reshape(B, 1, 1, T)


def attn_reference(last_hidden, encoder_outputs, params):
    """Pure-JAX reference mirroring the PyTorch forward exactly."""
    T, B, H = encoder_outputs.shape
    enc = jnp.transpose(encoder_outputs, (1, 0, 2)).reshape(-1, H)           # [B*T, H]
    hid = jnp.broadcast_to(last_hidden[0][:, None, :], (B, T, H)).reshape(-1, H)
    dec = enc @ params['w_h'].T
    dec = dec + (hid @ params['w_s'].T + params['b_s'])
    energy = jnp.tanh(dec)
    attn = (energy @ params['v'].reshape(H, 1)).reshape(B, 1, T)             # [B, 1, T]
    p = jax.nn.softmax(attn, axis=0)   # legacy implicit dim for 3-D tensors
    return p[:, None]                  # unsqueeze(1) -> [B, 1, 1, T]


def init_params(key, hidden_size):
    """Deterministic params with PyTorch-Linear-style uniform(-1/sqrt(H), 1/sqrt(H))."""
    k1, k2, k3, k4 = jax.random.split(key, 4)
    bound = 1.0 / math.sqrt(hidden_size)
    u = lambda k, shp: jax.random.uniform(k, shp, jnp.float32, -bound, bound)
    return {
        'w_h': u(k1, (hidden_size, hidden_size)),  # hidden_h.weight  [out, in]
        'w_s': u(k2, (hidden_size, hidden_size)),  # hidden_s.weight
        'b_s': u(k3, (hidden_size,)),              # hidden_s.bias
        'v':   u(k4, (1, hidden_size)),            # v.weight
    }


if __name__ == "__main__":
    key = jax.random.PRNGKey(0)
    kp, kh, ke, kh2, ke2 = jax.random.split(key, 5)

    # Small config consistent with the module: B=2, src_len T=8, hidden H=32.
    B, T, H = 2, 8, 32
    params = init_params(kp, H)
    kparams = prepare_attn_params(params)        # one-time, outside decode loop

    last_hidden = jax.random.normal(kh, (1, B, H), jnp.float32)        # [tgt_len=1, B, H]
    encoder_outputs = jax.random.normal(ke, (T, B, H), jnp.float32)    # [src_len, B, H]

    out = jax.block_until_ready(attn_forward(last_hidden, encoder_outputs, kparams))
    ref = attn_reference(last_hidden, encoder_outputs, params)
    assert out.shape == (B, 1, 1, T), out.shape
    assert jnp.allclose(out, ref, atol=2e-3, rtol=2e-3), (
        f"max abs err {jnp.max(jnp.abs(out - ref))}")

    # Larger shape exercising the T-tiled grid + padding path (grid of 3 tiles).
    B2, T2 = 4, 300
    last_hidden2 = jax.random.normal(kh2, (1, B2, H), jnp.float32)
    encoder_outputs2 = jax.random.normal(ke2, (T2, B2, H), jnp.float32)
    out2 = jax.block_until_ready(attn_forward(last_hidden2, encoder_outputs2, kparams))
    ref2 = attn_reference(last_hidden2, encoder_outputs2, params)
    assert out2.shape == (B2, 1, 1, T2), out2.shape
    assert jnp.allclose(out2, ref2, atol=2e-3, rtol=2e-3), (
        f"max abs err {jnp.max(jnp.abs(out2 - ref2))}")

    print("KERNEL_OK")
</pallas_src>

<mosaic_0001>
module attributes {stable_mosaic.version = 11 : i64} {
  func.func @attn_kernel(%arg0: i32, %arg1: memref<8x2x32xf32, #tpu.memory_space<vmem>>, %arg2: memref<2x32xf32, #tpu.memory_space<vmem>>, %arg3: memref<32x32xf32, #tpu.memory_space<vmem>>, %arg4: memref<32x32xf32, #tpu.memory_space<vmem>>, %arg5: memref<1x32xf32, #tpu.memory_space<vmem>>, %arg6: memref<1x32xf32, #tpu.memory_space<vmem>>, %arg7: memref<8x2xf32, #tpu.memory_space<vmem>>) attributes {dimension_semantics = [#tpu.dimension_semantics<parallel>], iteration_bounds = array<i64: 1>, scalar_prefetch = 0 : i64, scratch_operands = 0 : i64, tpu.core_type = #tpu.core_type<tc>, window_params = [{transform_indices = @transform_0, window_bounds = array<i64: 8, 2, 32>}, {pipeline_mode = #tpu.pipeline_mode<synchronous>, transform_indices = @transform_1, window_bounds = array<i64: 2, 32>}, {pipeline_mode = #tpu.pipeline_mode<synchronous>, transform_indices = @transform_2, window_bounds = array<i64: 32, 32>}, {pipeline_mode = #tpu.pipeline_mode<synchronous>, transform_indices = @transform_3, window_bounds = array<i64: 32, 32>}, {pipeline_mode = #tpu.pipeline_mode<synchronous>, transform_indices = @transform_4, window_bounds = array<i64: 1, 32>}, {pipeline_mode = #tpu.pipeline_mode<synchronous>, transform_indices = @transform_5, window_bounds = array<i64: 1, 32>}, {transform_indices = @transform_6, window_bounds = array<i64: 8, 2>}]} {
    %c0 = arith.constant 0 : index
    %c0_0 = arith.constant 0 : index
    %c0_1 = arith.constant 0 : index
    %0 = vector.load %arg1[%c0, %c0_0, %c0_1] : memref<8x2x32xf32, #tpu.memory_space<vmem>>, vector<8x2x32xf32>
    %1 = vector.shape_cast %0 : vector<8x2x32xf32> to vector<16x32xf32>
    %c0_2 = arith.constant 0 : index
    %c0_3 = arith.constant 0 : index
    %2 = vector.load %arg3[%c0_2, %c0_3] : memref<32x32xf32, #tpu.memory_space<vmem>>, vector<32x32xf32>
    %cst = arith.constant dense<0.000000e+00> : vector<16x32xf32>
    %3 = tpu.matmul %1, %2, %cst {dimension_numbers = #tpu.dot_dimension_numbers<[1], [0], [0], [1], [0, 0, 1, 1], [], []>} : vector<16x32xf32>, vector<32x32xf32>, vector<16x32xf32> -> vector<16x32xf32>
    %c0_4 = arith.constant 0 : index
    %c0_5 = arith.constant 0 : index
    %4 = vector.load %arg2[%c0_4, %c0_5] : memref<2x32xf32, #tpu.memory_space<vmem>>, vector<2x32xf32>
    %c0_6 = arith.constant 0 : index
    %c0_7 = arith.constant 0 : index
    %5 = vector.load %arg4[%c0_6, %c0_7] : memref<32x32xf32, #tpu.memory_space<vmem>>, vector<32x32xf32>
    %cst_8 = arith.constant dense<0.000000e+00> : vector<2x32xf32>
    %6 = tpu.matmul %4, %5, %cst_8 {dimension_numbers = #tpu.dot_dimension_numbers<[1], [0], [0], [1], [0, 0, 1, 1], [], []>} : vector<2x32xf32>, vector<32x32xf32>, vector<2x32xf32> -> vector<2x32xf32>
    %c0_9 = arith.constant 0 : index
    %c0_10 = arith.constant 0 : index
    %7 = vector.load %arg5[%c0_9, %c0_10] : memref<1x32xf32, #tpu.memory_space<vmem>>, vector<1x32xf32>
    %8 = vector.broadcast %7 : vector<1x32xf32> to vector<2x32xf32>
    %9 = arith.addf %6, %8 : vector<2x32xf32>
    %10 = vector.shape_cast %3 : vector<16x32xf32> to vector<8x2x32xf32>
    %11 = vector.shape_cast %9 : vector<2x32xf32> to vector<1x2x32xf32>
    %12 = vector.broadcast %11 : vector<1x2x32xf32> to vector<8x2x32xf32>
    %13 = arith.addf %10, %12 : vector<8x2x32xf32>
    %14 = math.tanh %13 : vector<8x2x32xf32>
    %c0_11 = arith.constant 0 : index
    %c0_12 = arith.constant 0 : index
    %15 = vector.load %arg6[%c0_11, %c0_12] : memref<1x32xf32, #tpu.memory_space<vmem>>, vector<1x32xf32>
    %16 = vector.shape_cast %15 : vector<1x32xf32> to vector<1x1x32xf32>
    %17 = vector.broadcast %16 : vector<1x1x32xf32> to vector<8x2x32xf32>
    %18 = arith.mulf %14, %17 : vector<8x2x32xf32>
    %cst_13 = arith.constant dense<0.000000e+00> : vector<8x2xf32>
    %19 = vector.multi_reduction <add>, %18, %cst_13 [2] : vector<8x2x32xf32> to vector<8x2xf32>
    %cst_14 = arith.constant dense<0xFF800000> : vector<8xf32>
    %20 = vector.multi_reduction <maximumf>, %19, %cst_14 [1] : vector<8x2xf32> to vector<8xf32>
    %21 = vector.shape_cast %20 : vector<8xf32> to vector<8x1xf32>
    %22 = vector.broadcast %21 : vector<8x1xf32> to vector<8x2xf32>
    %23 = arith.subf %19, %22 : vector<8x2xf32>
    %24 = math.exp %23 : vector<8x2xf32>
    %cst_15 = arith.constant dense<0.000000e+00> : vector<8xf32>
    %25 = vector.multi_reduction <add>, %24, %cst_15 [1] : vector<8x2xf32> to vector<8xf32>
    %26 = vector.shape_cast %25 : vector<8xf32> to vector<8x1xf32>
    %27 = tpu.reciprocal %26 {approx = true} : vector<8x1xf32> -> vector<8x1xf32>
    %28 = vector.broadcast %27 : vector<8x1xf32> to vector<8x2xf32>
    %29 = arith.mulf %24, %28 : vector<8x2xf32>
    %c0_16 = arith.constant 0 : index
    %c0_17 = arith.constant 0 : index
    %30 = vector.load %arg7[%c0_16, %c0_17] : memref<8x2xf32, #tpu.memory_space<vmem>>, vector<8x2xf32>
    tpu.vector_store %arg7[%c0_16, %c0_17], %29 {strides = array<i32>} : memref<8x2xf32, #tpu.memory_space<vmem>>, vector<8x2xf32>,
    return
  }
  func.func @transform_0(%arg0: i32) -> (i32, i32, i32) {
    %c0_i32 = arith.constant 0 : i32
    %c0_i32_0 = arith.constant 0 : i32
    %c0_i32_1 = arith.constant 0 : i32
    return %arg0, %c0_i32, %c0_i32_0 : i32, i32, i32
  }
  func.func @transform_1(%arg0: i32) -> (i32, i32) {
    %c0_i32 = arith.constant 0 : i32
    %c0_i32_0 = arith.constant 0 : i32
    %c0_i32_1 = arith.constant 0 : i32
    return %c0_i32, %c0_i32_0 : i32, i32
  }
  func.func @transform_2(%arg0: i32) -> (i32, i32) {
    %c0_i32 = arith.constant 0 : i32
    %c0_i32_0 = arith.constant 0 : i32
    %c0_i32_1 = arith.constant 0 : i32
    return %c0_i32, %c0_i32_0 : i32, i32
  }
  func.func @transform_3(%arg0: i32) -> (i32, i32) {
    %c0_i32 = arith.constant 0 : i32
    %c0_i32_0 = arith.constant 0 : i32
    %c0_i32_1 = arith.constant 0 : i32
    return %c0_i32, %c0_i32_0 : i32, i32
  }
  func.func @transform_4(%arg0: i32) -> (i32, i32) {
    %c0_i32 = arith.constant 0 : i32
    %c0_i32_0 = arith.constant 0 : i32
    %c0_i32_1 = arith.constant 0 : i32
    return %c0_i32, %c0_i32_0 : i32, i32
  }
  func.func @transform_5(%arg0: i32) -> (i32, i32) {
    %c0_i32 = arith.constant 0 : i32
    %c0_i32_0 = arith.constant 0 : i32
    %c0_i32_1 = arith.constant 0 : i32
    return %c0_i32, %c0_i32_0 : i32, i32
  }
  func.func @transform_6(%arg0: i32) -> (i32, i32) {
    %c0_i32 = arith.constant 0 : i32
    %c0_i32_0 = arith.constant 0 : i32
    return %arg0, %c0_i32 : i32, i32
  }
}

</mosaic_0001>

<bundles_post_ra>
// kernel: tpu_custom_call.1
= control target key start
LH: loop header
LB: loop body
LE: loop exit
PB: predicated region body
PF: predicated region fallthrough
CT: control target
= control target key end

     0   :  { %11 = vsyncpa [#allocation3], 0  ;;  %s1092_s0 = inlined_call_operand.hbm [shape: f32[8,2,32], index: 0, kind: input, shape index: {}]   ;;  %s1093_s1 = inlined_call_operand.vmem [shape: f32[2,32], index: 1, kind: input, shape index: {}]   ;;  %s1094_s2 = inlined_call_operand.hbm [shape: f32[32,32], index: 2, kind: input, shape index: {}]   ;;  %s1095_s3 = inlined_call_operand.hbm [shape: f32[32,32], index: 3, kind: input, shape index: {}]   ;;  %s1096_s4 = inlined_call_operand.vmem [shape: f32[1,32], index: 4, kind: input, shape index: {}]   ;;  %s1097_s5 = inlined_call_operand.vmem [shape: f32[1,32], index: 5, kind: input, shape index: {}]   ;;  %s1098_s6 = inlined_call_operand.vmem [shape: f32[8,2], index: 6, kind: output, shape index: {}]  }
   0x1   :  { %12 = vsyncpa [#allocation5], 0  ;;  %s883_s21 = smov [#allocation4]   ;;  %s813_s25 = scalar_lea.hbm %s1094_s2, 512 }
   0x2   :  { %s32_s22 = sshll.u32 %s883_s21, 4  ;;  %p814_p0 = scmp.ne.s32.totalorder %s1094_s2, %s813_s25  ;;  %s33_s22 = int_to_ptr.vmem [resolvable:$true] %s32_s22 }
   0x3   :  { %p817_p1 = scmp.lt.u32.totalorder %s813_s25, %s1094_s2 }
   0x5   :  { %p819_p2 = pnand %p817_p1, %p814_p0 }
   0x7   :  { %822 = shalt.err (!%p819_p2)
}
   0x8   :  { %s823_s30 = scalar_lea.vmem %s33_s22, 512  ;;  %p828_p4 = scmp.lt.s32.totalorder %s33_s22, %s33_s22 }
   0x9   :  { %p824_p3 = scmp.ne.s32.totalorder %s33_s22, %s823_s30  ;;  %p829_p5 = scmp.lt.s32.totalorder %s823_s30, %s823_s30 }
   0xb   :  { %p830_p6 = por %p829_p5, %p828_p4 }
   0xd   :  { %p831_p7 = pnand %p830_p6, %p824_p3 }
   0xf   :  { %834 = shalt.err (!%p831_p7)
}
  0x10   :  { %s884_s7 = smov 128   ;;  %s885_s8 = smov 8  }
  0x11   :  { %38 = dma.hbm_to_vmem [thread:$0]  %s1094_s2, 512, %s33_s22, [#allocation5], %s884_s7, %s884_s7, %s885_s8  }
  0x12   :  { %s886_s11 = smov [#allocation2]   ;;  %s835_s15 = scalar_lea.hbm %s1092_s0, 256 }
  0x13   :  { %s18_s12 = sshll.u32 %s886_s11, 4  ;;  %p836_p8 = scmp.ne.s32.totalorder %s1092_s0, %s835_s15  ;;  %s19_s12 = int_to_ptr.vmem [resolvable:$true] %s18_s12 }
  0x14   :  { %p839_p9 = scmp.lt.u32.totalorder %s835_s15, %s1092_s0 }
  0x16   :  { %p841_p10 = pnand %p839_p9, %p836_p8 }
  0x18   :  { %844 = shalt.err (!%p841_p10)
}
  0x19   :  { %s845_s20 = scalar_lea.vmem %s19_s12, 256  ;;  %p850_p12 = scmp.lt.s32.totalorder %s19_s12, %s19_s12 }
  0x1a   :  { %p846_p11 = scmp.ne.s32.totalorder %s19_s12, %s845_s20  ;;  %p851_p13 = scmp.lt.s32.totalorder %s845_s20, %s845_s20 }
  0x1c   :  { %p852_p0 = por %p851_p13, %p850_p12 }
  0x1e   :  { %p853_p1 = pnand %p852_p0, %p846_p11 }
  0x20   :  { %856 = shalt.err (!%p853_p1)
}
  0x21   :  { %s887_s2 = smov 32   ;;  %s888_s21 = smov 2  }
  0x22   :  { %24 = dma.hbm_to_vmem [thread:$0]  %s1092_s0, 256, %s19_s12, [#allocation3], %s887_s2, %s887_s2, %s888_s21  }
  0x23   :  { %s889_s24 = smov [#allocation6]   ;;  %s857_s28 = scalar_lea.hbm %s1095_s3, 512 }
  0x24   :  { %s44_s25 = sshll.u32 %s889_s24, 4  ;;  %p858_p2 = scmp.ne.s32.totalorder %s1095_s3, %s857_s28  ;;  %s45_s25 = int_to_ptr.vmem [resolvable:$true] %s44_s25 }
  0x25   :  { %p861_p3 = scmp.lt.u32.totalorder %s857_s28, %s1095_s3 }
  0x27   :  { %p863_p4 = pnand %p861_p3, %p858_p2 }
  0x29   :  { %866 = shalt.err (!%p863_p4)
}
  0x2a   :  { %s867_s11 = scalar_lea.vmem %s45_s25, 512  ;;  %p872_p6 = scmp.lt.s32.totalorder %s45_s25, %s45_s25 }
  0x2b   :  { %p868_p5 = scmp.ne.s32.totalorder %s45_s25, %s867_s11  ;;  %p873_p7 = scmp.lt.s32.totalorder %s867_s11, %s867_s11 }
  0x2d   :  { %p874_p8 = por %p873_p7, %p872_p6 }
  0x2f   :  { %p875_p9 = pnand %p874_p8, %p868_p5 }
  0x31   :  { %878 = shalt.err (!%p875_p9)
}
  0x32   :  { %50 = dma.hbm_to_vmem [thread:$0]  %s1095_s3, 512, %s45_s25, [#allocation5], %s884_s7, %s884_s7, %s885_s8  }
  0x33   :  { %879 = dma.done.wait [#allocation3], 256  }
  0x34   :  { %880 = vsyncadd [#allocation3], 4294967040 }
  0x35   :  { %881 = dma.done.wait [#allocation5], 1024  }
  0x36   :  { %882 = vsyncadd [#allocation5], 4294966272  ;;  %v890_v0 = vmov 0.0|0.0   ;;  %v891_v1 = vmov 1983009808   ;;  %v89_v3 = vlaneseq  ;;  %vm892_vm0 = vmmov 0  }
  0x37   :  { %759 = vmatprep.subr.bf16.mxu1 %v890_v0  ;;  %v87_v2 = vunpack.c.l.s4 %v891_v1  ;;  %v893_v4 = vmov 0.0   ;;  %v72_v7 = vld [vmem:[#allocation4] sm:$0xff]  ;;  %v73_v8 = vld [vmem:[#allocation4 + $0x8] sm:$0xff]  ;;  %v74_v12 = vld [vmem:[#allocation4 + $0x10] sm:$0xff]  ;;  %vm118_vm1 = vcmask 261120   ;;  %vm358_vm2 = vcmask 254976  }
  0x38   :  { %748 = vmatprep.mubr.msk.f32.mxu1 %vm892_vm0, %v893_v4  ;;  %v973_v6 = vshrl.u32 %v89_v3, 7  ;;  %v199_v9 = vld [vmem:[#allocation6] sm:$0xff]  ;;  %v751_v10 = vpack.c.bf16 %v73_v8, %v72_v7  ;;  %v200_v11 = vld [vmem:[#allocation6 + $0x8] sm:$0xff]  ;;  %v75_v13 = vld [vmem:[#allocation4 + $0x18] sm:$0xff]  ;;  %vm425_vm3 = vcmask 1041409   ;;  %vm427_vm4 = vcmask 1042434  }
  0x39   :  { %v88_v5 = vunpack.c.0.s8 %v87_v2  ;;  %v760_v14 = vpack.c.bf16 %v200_v11, %v199_v9  ;;  %v755_v15 = vpack.c.bf16 %v75_v13, %v74_v12  ;;  %v201_v16 = vld [vmem:[#allocation6 + $0x10] sm:$0xff]  ;;  %v202_v17 = vld [vmem:[#allocation6 + $0x18] sm:$0xff]  ;;  %vm429_vm5 = vcmask 1043459  }
  0x3a   :  { %v64_v18 = vld [vmem:[#allocation2] sm:$0x3]  ;;  %752 = vmatprep.subr.bf16.mxu0 %v751_v10  ;;  %v65_v20 = vld [vmem:[#allocation2 + $0x2] sm:$0x3]  ;;  %v66_v21 = vld [vmem:[#allocation2 + $0x4] sm:$0x3]  ;;  %v763_v23 = vpack.c.bf16 %v202_v17, %v201_v16 }
  0x3b   :  { %v91_v19 = vsub.s32 %v88_v5, %v973_v6  ;;  %v67_v22 = vld [vmem:[#allocation2 + $0x6] sm:$0x3]  ;;  %754 = vmatpush3.bf16.msra.mxu0 %v751_v10  ;;  %761 = vmatpush3.bf16.msra.mxu1 %v760_v14  ;;  %v84_v24 = vcombine.low %v64_v18, %v65_v20  ;;  %v68_v26 = vld [vmem:[#allocation2 + $0x8] sm:$0x3]  ;;  %v69_v27 = vld [vmem:[#allocation2 + $0xa] sm:$0x3] }
  0x3c   :  { %v85_v25 = vcombine.low %v66_v21, %v67_v22  ;;  %v70_v28 = vld [vmem:[#allocation2 + $0xc] sm:$0x3]  ;;  %756 = vmatprep.subr.bf16.mxu0 %v755_v15  ;;  %762 = vmatprep.subr.bf16.mxu1 %v890_v0  ;;  %v71_v29 = vld [vmem:[#allocation2 + $0xe] sm:$0x3]  ;;  %v101_v30 = vcombine.low %v68_v26, %v69_v27  ;;  %v198_v37 = vld [vmem:[%s1093_s1] sm:$0x3] }
  0x3d   :  { %v92_v31 = vrot.slane %v84_v24, %v91_v19  ;;  %v102_v33 = vcombine.low %v70_v28, %v71_v29  ;;  %v715_v39 = vld [vmem:[%s1096_s4] ss:$0 sm:$0xff]  ;;  %v392_v26 = vand.u32 127, %v89_v3  ;;  %vm431_vm6 = vcmask 1044484  }
  0x3e   :  { %v99_v32 = vrot.slane %v85_v25, %v91_v19  ;;  %v109_v34 = vrot.slane %v101_v30, %v91_v19  ;;  %v717_v63 = vld [vmem:[%s1097_s5] ss:$0 sm:$0xff]  ;;  %vm433_vm7 = vcmask 1045509   ;;  %vm435_vm8 = vcmask 1046534  }
  0x3f   :  { %758 = vmatpush3.bf16.msra.mxu0 %v755_v15  ;;  %764 = vmatpush3.bf16.msra.mxu1 %v763_v23  ;;  %v116_v36 = vrot.slane %v102_v33, %v91_v19  ;;  %v997_v29 = vsub.s32 %v392_v26, %v973_v6  ;;  %vm437_vm9 = vcmask 1047559   ;;  %vm440_vm10 = vcmask 15360  }
  0x40   :  { %v100_v35 = vcombine.low %v92_v31, %v99_v32 }
  0x41   :  { %v117_v38 = vcombine.low %v109_v34, %v116_v36 }
  0x42   :  { %737 = vmatprep.mubr.msk.f32.mxu0 %vm118_vm1, %v100_v35  ;;  %749 = vmatmul.mubr.msk.f32.vlgmr.msra.gmra.mrb[0].mxu1 %vm118_vm1, %v198_v37 }
  0x43   :  { %738 = vmatmul.mubr.msk.f32.vlgmr.msra.gmra.mrb[0].mxu0 %vm118_vm1, %v117_v38 }
 0x115   :  { %v279_v40 = vpop.f32.mrb[0].mxu1 }
 0x116   :  { %v739_v41 = vpop.f32.mrb[0].mxu0  ;;  %v280_v42 = vadd.f32 %v715_v39, %v279_v40  ;;  %v750_v43 = vpop.f32.mrb[1].mxu1 }
 0x117   :  { %v302_v44 = vcombine.high %v739_v41, %v739_v41  ;;  %v309_v45 = vrot.slane %v739_v41, %v91_v19  ;;  %v189_v46 = vpop.f32.mrb[1].mxu0 }
 0x118   :  { %v285_v47 = vcombine.high %v189_v46, %v189_v46  ;;  %v292_v48 = vrot.slane %v189_v46, %v91_v19 }
 0x119   :  { %v316_v49 = vrot.slane %v302_v44, %v91_v19  ;;  %v317_v50 = vcombine.high %v309_v45, %v309_v45  ;;  %v331_v51 = vadd.f32 %v309_v45, %v280_v42 }
 0x11a   :  { %v299_v52 = vrot.slane %v285_v47, %v91_v19  ;;  %v300_v53 = vcombine.high %v292_v48, %v292_v48  ;;  %v327_v54 = vadd.f32 %v292_v48, %v280_v42 }
 0x11b   :  { %v318_v55 = vcombine.high %v316_v49, %v316_v49  ;;  %v332_v56 = vadd.f32 %v317_v50, %v280_v42  ;;  %v333_v57 = vadd.f32 %v316_v49, %v280_v42 }
 0x11c   :  { %v301_v58 = vcombine.high %v299_v52, %v299_v52  ;;  %v328_v59 = vadd.f32 %v300_v53, %v280_v42  ;;  %v329_v60 = vadd.f32 %v299_v52, %v280_v42  ;;  %779 = vtanh.f32 %v327_v54 }
 0x11d   :  { %781 = vtanh.f32 %v332_v56  ;;  %v334_v61 = vadd.f32 %v318_v55, %v280_v42  ;;  %v447_v52 = vsub.s32 0, %v973_v6  ;;  %v451_v53 = vsub.s32 1, %v973_v6 }
 0x11e   :  { %v330_v62 = vadd.f32 %v301_v58, %v280_v42  ;;  %783 = vtanh.f32 %v328_v59  ;;  %v455_v54 = vsub.s32 2, %v973_v6  ;;  %v459_v55 = vsub.s32 3, %v973_v6 }
 0x11f   :  { %785 = vtanh.f32 %v329_v60  ;;  %v463_v60 = vsub.s32 4, %v973_v6 }
 0x120   :  { %787 = vtanh.f32 %v331_v51  ;;  %v894_v51 = vmov 0  }
 0x121   :  { %789 = vtanh.f32 %v330_v62  ;;  %778 = vset.pattern.permute.xlu0 %v894_v51  ;;  %777 = vset.pattern.permute.xlu1 %v894_v51 }
 0x122   :  { %791 = vtanh.f32 %v333_v57 }
 0x123   :  { %793 = vtanh.f32 %v334_v61 }
 0x126   :  { %v780_v0 = vpop.eup %779 }
 0x127   :  { %v782_v1 = vpop.eup %781  ;;  %v350_v2 = vmul.f32 %v780_v0, %v717_v63 }
 0x128   :  { %v784_v4 = vpop.eup %783  ;;  %v355_v5 = vmul.f32 %v782_v1, %v717_v63 }
 0x129   :  { %v786_v7 = vpop.eup %785  ;;  %v359_v8 = vsel %vm358_vm2, %v350_v2, 0.0  ;;  %v351_v9 = vmul.f32 %v784_v4, %v717_v63  ;;  %v467_v4 = vsub.s32 5, %v973_v6 }
 0x12a   :  { %v788_v10 = vpop.eup %787  ;;  %360 = vadd.xlane.f32.xlu0 %v359_v8  ;;  %v374_v11 = vsel %vm358_vm2, %v355_v5, 0.0  ;;  %v352_v12 = vmul.f32 %v786_v7, %v717_v63 }
 0x12b   :  { %v790_v13 = vpop.eup %789  ;;  %375 = vadd.xlane.f32.xlu1 %v374_v11  ;;  %v362_v14 = vsel %vm358_vm2, %v351_v9, 0.0  ;;  %v354_v15 = vmul.f32 %v788_v10, %v717_v63  ;;  %v471_v9 = vsub.s32 6, %v973_v6 }
 0x12c   :  { %v792_v16 = vpop.eup %791  ;;  %v365_v17 = vsel %vm358_vm2, %v352_v12, 0.0  ;;  %v353_v18 = vmul.f32 %v790_v13, %v717_v63  ;;  %v475_v13 = vsub.s32 7, %v973_v6 }
 0x12d   :  { %v794_v19 = vpop.eup %793  ;;  %v371_v20 = vsel %vm358_vm2, %v354_v15, 0.0  ;;  %v356_v21 = vmul.f32 %v792_v16, %v717_v63 }
 0x12e   :  { %363 = vadd.xlane.f32.xlu0 %v362_v14  ;;  %v368_v22 = vsel %vm358_vm2, %v353_v18, 0.0  ;;  %v357_v23 = vmul.f32 %v794_v19, %v717_v63 }
 0x12f   :  { %366 = vadd.xlane.f32.xlu1 %v365_v17  ;;  %v377_v24 = vsel %vm358_vm2, %v356_v21, 0.0 }
 0x130   :  { %v380_v25 = vsel %vm358_vm2, %v357_v23, 0.0 }
 0x132   :  { %372 = vadd.xlane.f32.xlu0 %v371_v20 }
 0x133   :  { %369 = vadd.xlane.f32.xlu1 %v368_v22 }
 0x136   :  { %378 = vadd.xlane.f32.xlu0 %v377_v24 }
 0x137   :  { %381 = vadd.xlane.f32.xlu1 %v380_v25 }
 0x1b7   :  { %v361_v27 = vpop.xlane.xlu0 %360 }
 0x1b8   :  { %v994_v28 = vpop.xlane.xlu1 %375  ;;  %v396_v33 = vrot.slane %v361_v27, %v997_v29 }
 0x1b9   :  { %v416_v40 = vrot.slane %v994_v28, %v997_v29 }
 0x1bb   :  { %v364_v30 = vpop.xlane.xlu0 %363 }
 0x1bc   :  { %v400_v31 = vrot.slane %v364_v30, %v997_v29  ;;  %v367_v32 = vpop.xlane.xlu1 %366 }
 0x1bd   :  { %v404_v34 = vrot.slane %v367_v32, %v997_v29 }
 0x1be   :  { %v426_v35 = vsel %vm425_vm3, %v400_v31, %v396_v33 }
 0x1bf   :  { %v373_v36 = vpop.xlane.xlu0 %372  ;;  %v428_v38 = vsel %vm427_vm4, %v404_v34, %v426_v35 }
 0x1c0   :  { %v370_v3 = vpop.xlane.xlu1 %369  ;;  %v412_v39 = vrot.slane %v373_v36, %v997_v29 }
 0x1c1   :  { %v408_v37 = vrot.slane %v370_v3, %v997_v29 }
 0x1c3   :  { %v430_v41 = vsel %vm429_vm5, %v408_v37, %v428_v38  ;;  %v379_v42 = vpop.xlane.xlu0 %378 }
 0x1c4   :  { %v420_v43 = vrot.slane %v379_v42, %v997_v29  ;;  %v382_v44 = vpop.xlane.xlu1 %381  ;;  %v432_v45 = vsel %vm431_vm6, %v412_v39, %v430_v41 }
 0x1c5   :  { %v424_v46 = vrot.slane %v382_v44, %v997_v29  ;;  %v434_v47 = vsel %vm433_vm7, %v416_v40, %v432_v45 }
 0x1c6   :  { %v436_v48 = vsel %vm435_vm8, %v420_v43, %v434_v47 }
 0x1c7   :  { %v438_v49 = vsel %vm437_vm9, %v424_v46, %v436_v48 }
 0x1c8   :  { %v441_v50 = vsel %vm440_vm10, %v438_v49, -inf }
 0x1c9   :  { %442 = vmax.xlane.f32.xlu0 %v441_v50 }
 0x256   :  { %v443_v56 = vpop.xlane.xlu0 %442 }
 0x257   :  { %v448_v57 = vrot.slane %v443_v56, %v447_v52  ;;  %v452_v58 = vrot.slane %v443_v56, %v451_v53  ;;  %v456_v59 = vrot.slane %v443_v56, %v455_v54  ;;  %v460_v61 = vrot.slane %v443_v56, %v459_v55 }
 0x258   :  { %v464_v5 = vrot.slane %v443_v56, %v463_v60  ;;  %v468_v10 = vrot.slane %v443_v56, %v467_v4  ;;  %v472_v14 = vrot.slane %v443_v56, %v471_v9  ;;  %v476_v19 = vrot.slane %v443_v56, %v475_v13 }
 0x259   :  { %v485_v62 = vsub.f32 %v361_v27, %v448_v57  ;;  %v486_v63 = vsub.f32 %v364_v30, %v452_v58  ;;  %v487_v0 = vsub.f32 %v367_v32, %v456_v59  ;;  %v488_v7 = vsub.f32 %v370_v3, %v460_v61 }
 0x25a   :  { %v489_v11 = vsub.f32 %v373_v36, %v464_v5  ;;  %v490_v15 = vsub.f32 %v994_v28, %v468_v10  ;;  %v491_v20 = vsub.f32 %v379_v42, %v472_v14  ;;  %v492_v23 = vsub.f32 %v382_v44, %v476_v19 }
 0x25b   :  { %v493_v1 = vmul.f32 1.442695, %v485_v62  ;;  %v495_v2 = vmul.f32 1.442695, %v486_v63  ;;  %v497_v8 = vmul.f32 1.442695, %v487_v0 }
 0x25c   :  { %v499_v12 = vmul.f32 1.442695, %v488_v7  ;;  %v501_v16 = vmul.f32 1.442695, %v489_v11  ;;  %v503_v21 = vmul.f32 1.442695, %v490_v15 }
 0x25d   :  { %795 = vpow2.f32 %v493_v1  ;;  %v505_v24 = vmul.f32 1.442695, %v491_v20  ;;  %v507_v26 = vmul.f32 1.442695, %v492_v23 }
 0x25e   :  { %797 = vpow2.f32 %v495_v2 }
 0x25f   :  { %799 = vpow2.f32 %v497_v8 }
 0x260   :  { %801 = vpow2.f32 %v499_v12 }
 0x261   :  { %803 = vpow2.f32 %v501_v16 }
 0x262   :  { %805 = vpow2.f32 %v503_v21 }
 0x263   :  { %807 = vpow2.f32 %v505_v24 }
 0x264   :  { %809 = vpow2.f32 %v507_v26 }
 0x267   :  { %v796_v17 = vpop.eup %795 }
 0x268   :  { %v798_v18 = vpop.eup %797  ;;  %518 = vperm.xlu1 %777, %v796_v17  }
 0x269   :  { %521 = vperm.xlu0 %778, %v798_v18   ;;  %v800_v22 = vpop.eup %799 }
 0x26a   :  { %v802_v25 = vpop.eup %801 }
 0x26b   :  { %v804_v27 = vpop.eup %803 }
 0x26c   :  { %524 = vperm.xlu1 %777, %v800_v22   ;;  %v806_v28 = vpop.eup %805 }
 0x26d   :  { %v808_v30 = vpop.eup %807 }
 0x26e   :  { %v810_v31 = vpop.eup %809 }
 0x270   :  { %527 = vperm.xlu1 %777, %v802_v25  }
 0x274   :  { %530 = vperm.xlu1 %777, %v804_v27  }
 0x278   :  { %533 = vperm.xlu1 %777, %v806_v28  }
 0x27c   :  { %536 = vperm.xlu1 %777, %v808_v30  }
 0x280   :  { %539 = vperm.xlu1 %777, %v810_v31  }
 0x2e7   :  { %v519_v32 = vpop.permute.xlu1 %518 }
 0x2e8   :  { %v522_v36 = vpop.permute.xlu0 %521  ;;  %v544_v38 = vrot.slane %v519_v32, %v997_v29 }
 0x2e9   :  { %v548_v37 = vrot.slane %v522_v36, %v997_v29 }
 0x2eb   :  { %v525_v33 = vpop.permute.xlu1 %524  ;;  %v573_v43 = vsel %vm425_vm3, %v548_v37, %v544_v38 }
 0x2ec   :  { %v552_v39 = vrot.slane %v525_v33, %v997_v29 }
 0x2ee   :  { %v574_v45 = vsel %vm427_vm4, %v552_v39, %v573_v43 }
 0x2ef   :  { %v528_v34 = vpop.permute.xlu1 %527 }
 0x2f0   :  { %v556_v40 = vrot.slane %v528_v34, %v997_v29 }
 0x2f2   :  { %v575_v47 = vsel %vm429_vm5, %v556_v40, %v574_v45 }
 0x2f3   :  { %v531_v35 = vpop.permute.xlu1 %530 }
 0x2f4   :  { %v560_v41 = vrot.slane %v531_v35, %v997_v29 }
 0x2f6   :  { %v576_v48 = vsel %vm431_vm6, %v560_v41, %v575_v47 }
 0x2f7   :  { %v534_v3 = vpop.permute.xlu1 %533 }
 0x2f8   :  { %v564_v44 = vrot.slane %v534_v3, %v997_v29 }
 0x2fa   :  { %v577_v50 = vsel %vm433_vm7, %v564_v44, %v576_v48 }
 0x2fb   :  { %v537_v42 = vpop.permute.xlu1 %536 }
 0x2fc   :  { %v568_v46 = vrot.slane %v537_v42, %v997_v29 }
 0x2fe   :  { %v578_v56 = vsel %vm435_vm8, %v568_v46, %v577_v50 }
 0x2ff   :  { %v540_v49 = vpop.permute.xlu1 %539 }
 0x300   :  { %v572_v51 = vrot.slane %v540_v49, %v997_v29 }
 0x302   :  { %v579_v57 = vsel %vm437_vm9, %v572_v51, %v578_v56 }
 0x303   :  { %v581_v58 = vsel %vm440_vm10, %v579_v57, 0.0 }
 0x304   :  { %582 = vadd.xlane.f32.xlu1 %v581_v58 }
 0x391   :  { %v583_v59 = vpop.xlane.xlu1 %582 }
 0x392   :  { %811 = vrcp.f32 %v583_v59 }
 0x39c   :  { %v812_v61 = vpop.eup %811 }
 0x39d   :  { %v589_v62 = vrot.slane %v812_v61, %v447_v52  ;;  %v593_v0 = vrot.slane %v812_v61, %v451_v53  ;;  %v597_v2 = vrot.slane %v812_v61, %v455_v54  ;;  %v601_v7 = vrot.slane %v812_v61, %v459_v55 }
 0x39e   :  { %v605_v10 = vrot.slane %v812_v61, %v463_v60  ;;  %v609_v53 = vrot.slane %v812_v61, %v467_v4  ;;  %v613_v54 = vrot.slane %v812_v61, %v471_v9  ;;  %v617_v55 = vrot.slane %v812_v61, %v475_v13 }
 0x39f   :  { %v626_v63 = vmul.f32 %v796_v17, %v589_v62  ;;  %v627_v1 = vmul.f32 %v798_v18, %v593_v0  ;;  %v628_v5 = vmul.f32 %v800_v22, %v597_v2  ;;  %v629_v8 = vmul.f32 %v802_v25, %v601_v7 }
 0x3a0   :  { %v630_v52 = vmul.f32 %v804_v27, %v605_v10  ;;  %v631_v11 = vmul.f32 %v806_v28, %v609_v53  ;;  %v632_v12 = vmul.f32 %v808_v30, %v613_v54  ;;  %v633_v14 = vmul.f32 %v810_v31, %v617_v55 }
 0x3a1   :  { %643 = vperm.xlu0 %778, %v626_v63  }
 0x3a5   :  { %646 = vperm.xlu0 %778, %v627_v1  }
 0x3a9   :  { %649 = vperm.xlu0 %778, %v628_v5  }
 0x3ad   :  { %652 = vperm.xlu0 %778, %v629_v8  }
 0x3b1   :  { %655 = vperm.xlu0 %778, %v630_v52  }
 0x3b5   :  { %658 = vperm.xlu0 %778, %v631_v11  }
 0x3b9   :  { %661 = vperm.xlu0 %778, %v632_v12  }
 0x3bd   :  { %664 = vperm.xlu0 %778, %v633_v14  }
 0x420   :  { %v644_v15 = vpop.permute.xlu0 %643 }
 0x421   :  { %v669_v9 = vrot.slane %v644_v15, %v997_v29 }
 0x424   :  { %v647_v60 = vpop.permute.xlu0 %646 }
 0x425   :  { %v673_v4 = vrot.slane %v647_v60, %v997_v29 }
 0x427   :  { %v698_v22 = vsel %vm425_vm3, %v673_v4, %v669_v9 }
 0x428   :  { %v650_v16 = vpop.permute.xlu0 %649 }
 0x429   :  { %v677_v20 = vrot.slane %v650_v16, %v997_v29 }
 0x42b   :  { %v699_v24 = vsel %vm427_vm4, %v677_v20, %v698_v22 }
 0x42c   :  { %v653_v17 = vpop.permute.xlu0 %652 }
 0x42d   :  { %v681_v21 = vrot.slane %v653_v17, %v997_v29 }
 0x42f   :  { %v700_v26 = vsel %vm429_vm5, %v681_v21, %v699_v24 }
 0x430   :  { %v656_v18 = vpop.permute.xlu0 %655 }
 0x431   :  { %v685_v6 = vrot.slane %v656_v18, %v997_v29 }
 0x433   :  { %v701_v27 = vsel %vm431_vm6, %v685_v6, %v700_v26 }
 0x434   :  { %v659_v19 = vpop.permute.xlu0 %658 }
 0x435   :  { %v689_v23 = vrot.slane %v659_v19, %v997_v29 }
 0x437   :  { %v702_v30 = vsel %vm433_vm7, %v689_v23, %v701_v27 }
 0x438   :  { %v662_v13 = vpop.permute.xlu0 %661 }
 0x439   :  { %v693_v25 = vrot.slane %v662_v13, %v997_v29 }
 0x43b   :  { %v703_v32 = vsel %vm435_vm8, %v693_v25, %v702_v30 }
 0x43c   :  { %v665_v28 = vpop.permute.xlu0 %664 }
 0x43d   :  { %v697_v31 = vrot.slane %v665_v28, %v997_v29 }
 0x43f   :  { %v704_v33 = vsel %vm437_vm9, %v697_v31, %v703_v32 }
 0x440   :  { %706 = vst.msk [vmem:[%s1098_s6] sm:$0xff] %vm440_vm10, %v704_v33 }
 0x441   :  { %711 = vsyncpa [#allocation3], 1 }
 0x442   :  { %712 = vsyncpa [#allocation5], 1 }

</bundles_post_ra>
